<compile_context>
chip_gen: v7x
topology: tpu7x:2x2x1
jax: 0.10.0
libtpu: 0.0.40
codegen_flags: <defaults>
</compile_context>

<pallas_src>
import functools

import jax
import jax.numpy as jnp
from jax.experimental import pallas as pl
from jax.experimental.pallas import tpu as pltpu


def _mlp_kernel(x_ref, w1_ref, b1_ref, w2_ref, b2_ref, wo_ref, bo_ref, o_ref):
    """Fused 3-layer MLP on one batch tile.

    Weights/biases are whole-array resident blocks (block index never changes
    across the grid); x / out are tiled over the batch only. All matmuls
    accumulate in f32 on the MXU; bias add + ReLU run on the f32 accumulator
    before casting back to the (possibly bf16) compute dtype.

    Invariant: there is no cross-row (batch) reduction, so garbage rows of a
    ragged last input tile only feed output rows that Pallas masks on store.
    Do not add batch reductions without revisiting this.
    """
    cdt = w1_ref.dtype
    x = x_ref[...].astype(cdt)

    h = jnp.dot(x, w1_ref[...], preferred_element_type=jnp.float32) + b1_ref[...]
    h = jnp.maximum(h, 0.0).astype(cdt)

    h = jnp.dot(h, w2_ref[...], preferred_element_type=jnp.float32) + b2_ref[...]
    h = jnp.maximum(h, 0.0).astype(cdt)

    o_ref[...] = (
        jnp.dot(h, wo_ref[...], preferred_element_type=jnp.float32) + bo_ref[...]
    ).astype(o_ref.dtype)


def _round_up(x, m):
    return ((x + m - 1) // m) * m


def prepare_params(params, compute_dtype=jnp.bfloat16):
    """One-time conversion of params for the kernel (NOT done per forward call).

    Weights stay [in, out] (transpose of torch Linear's [out, in]) and are
    cast to the compute dtype (bf16 default: MXU-native on v5e/v6e/v7x).
    Biases are kept f32 (added to the f32 accumulator) and shaped (1, out).
    """
    cd = jnp.dtype(compute_dtype)
    return dict(
        w1=params["w1"].astype(cd),
        w2=params["w2"].astype(cd),
        wo=params["wo"].astype(cd),
        b1=params["b1"].reshape(1, -1).astype(jnp.float32),
        b2=params["b2"].reshape(1, -1).astype(jnp.float32),
        bo=params["bo"].reshape(1, -1).astype(jnp.float32),
    )


@functools.partial(jax.jit, static_argnames=("block_b",))
def net1_forward(x, params, block_b=512):
    """x: [B, n_feature]; params: output of prepare_params (weights [in, out])."""
    w1, b1 = params["w1"], params["b1"]
    w2, b2 = params["w2"], params["b2"]
    wo, bo = params["wo"], params["bo"]

    B, F = x.shape
    H = w1.shape[1]
    O = wo.shape[1]

    # Batch-only tiling, ragged last tile allowed (grid = cdiv).
    block_b_eff = min(block_b, _round_up(B, 8))
    # Give v7x's two TensorCores work when the batch is big enough for it.
    if B >= 256 and pl.cdiv(B, block_b_eff) < 2:
        block_b_eff = _round_up(pl.cdiv(B, 2), 8)
    grid = (pl.cdiv(B, block_b_eff),)

    w_item = jnp.dtype(w1.dtype).itemsize
    x_item = jnp.dtype(x.dtype).itemsize

    # VMEM budget: resident weights/biases (pipeline still double-buffers the
    # constant blocks) + double-buffered x/out tiles + f32 activation working
    # set, 1.5x headroom + 4 MiB, capped well below physical VMEM.
    wbytes = 2 * (F * H + H * H + H * O) * w_item
    bbytes = 2 * (2 * H + O) * 4
    xbytes = 2 * block_b_eff * F * x_item
    obytes = 2 * block_b_eff * O * 4
    abytes = 4 * block_b_eff * H * 4
    vmem_est = int(1.5 * (wbytes + bbytes + xbytes + obytes + abytes)) + (4 << 20)
    try:
        vmem_cap = int(0.75 * pltpu.get_tpu_info().vmem_capacity_bytes)
    except Exception:
        vmem_cap = 48 << 20  # conservative: safe even on v7x's 64 MiB VMEM
    vmem_bytes = min(vmem_est, vmem_cap)

    cost = pl.CostEstimate(
        flops=2 * B * (F * H + H * H + H * O),
        transcendentals=0,
        bytes_accessed=(x.size * x_item
                        + (w1.size + w2.size + wo.size) * w_item
                        + (b1.size + b2.size + bo.size) * 4
                        + B * O * 4),
    )

    # Resident (constant-index) blocks. NOTE: for large resident weights these
    # would ideally be single-buffered (pipeline_mode=pl.Buffered(1)); skipped
    # here since the weights are tiny (H=32) and support varies by jax version.
    full = lambda shape: pl.BlockSpec(shape, lambda i: (0, 0))

    out = pl.pallas_call(
        _mlp_kernel,
        out_shape=jax.ShapeDtypeStruct((B, O), jnp.float32),
        grid_spec=pl.GridSpec(
            grid=grid,
            in_specs=[
                pl.BlockSpec((block_b_eff, F), lambda i: (i, 0)),  # x batch tile
                full((F, H)), full((1, H)),                        # hidden1
                full((H, H)), full((1, H)),                        # hidden2
                full((H, O)), full((1, O)),                        # out layer
            ],
            out_specs=pl.BlockSpec((block_b_eff, O), lambda i: (i, 0)),
        ),
        compiler_params=pltpu.CompilerParams(
            dimension_semantics=("parallel",),
            vmem_limit_bytes=vmem_bytes,
        ),
        cost_estimate=cost,
    )(x, w1, b1, w2, b2, wo, bo)

    # NOTE: for very large n_hidden (H^2 weights no longer fitting VMEM, esp.
    # v7x's 64 MiB) this design needs an extra "arbitrary" grid axis tiling
    # the contraction with a pl.when-initialized f32 accumulator.
    return out


def init_params(key, n_feature, n_hidden, n_output):
    """Deterministic init mimicking torch.nn.Linear default U(-1/sqrt(fan_in), +)."""
    def linear(k, fan_in, fan_out):
        kw, kb = jax.random.split(k)
        bound = 1.0 / jnp.sqrt(fan_in)
        w = jax.random.uniform(kw, (fan_in, fan_out), jnp.float32, -bound, bound)
        b = jax.random.uniform(kb, (1, fan_out), jnp.float32, -bound, bound)
        return w, b

    k1, k2, k3 = jax.random.split(key, 3)
    w1, b1 = linear(k1, n_feature, n_hidden)
    w2, b2 = linear(k2, n_hidden, n_hidden)
    wo, bo = linear(k3, n_hidden, n_output)
    return dict(w1=w1, b1=b1, w2=w2, b2=b2, wo=wo, bo=bo)


def net1_reference(x, params):
    """Pure-JAX reference for correctness checking (matches Net_1.forward)."""
    h = jnp.maximum(x.astype(jnp.float32) @ params["w1"] + params["b1"], 0.0)
    h = jnp.maximum(h @ params["w2"] + params["b2"], 0.0)
    return h @ params["wo"] + params["bo"]


if __name__ == "__main__":
    key = jax.random.PRNGKey(0)
    k_param, k_x = jax.random.split(key)

    n_feature, n_hidden, n_output = 16, 32, 4
    batch = 8

    params = init_params(k_param, n_feature, n_hidden, n_output)
    x = jax.random.normal(k_x, (batch, n_feature), dtype=jnp.float32)

    ref = net1_reference(x, params)

    # Default production path: bf16 weights / inter-layer activations, f32 acc.
    out_bf16 = net1_forward(x, prepare_params(params, jnp.bfloat16))
    out_bf16 = jax.block_until_ready(out_bf16)
    assert out_bf16.shape == (batch, n_output)
    assert jnp.allclose(out_bf16, ref, atol=1e-1, rtol=1e-1), "bf16 path mismatch"

    # f32 path for a tight numerical check against the reference.
    out_f32 = net1_forward(x, prepare_params(params, jnp.float32))
    out_f32 = jax.block_until_ready(out_f32)
    assert out_f32.shape == (batch, n_output)
    assert jnp.allclose(out_f32, ref, atol=1e-4, rtol=1e-4), "f32 path mismatch"

    print("KERNEL_OK")
</pallas_src>

<mosaic_0001>
module attributes {stable_mosaic.version = 11 : i64} {
  func.func @_mlp_kernel(%arg0: i32, %arg1: memref<8x16xf32, #tpu.memory_space<vmem>>, %arg2: memref<16x32xbf16, #tpu.memory_space<vmem>>, %arg3: memref<1x32xf32, #tpu.memory_space<vmem>>, %arg4: memref<32x32xbf16, #tpu.memory_space<vmem>>, %arg5: memref<1x32xf32, #tpu.memory_space<vmem>>, %arg6: memref<32x4xbf16, #tpu.memory_space<vmem>>, %arg7: memref<1x4xf32, #tpu.memory_space<vmem>>, %arg8: memref<8x4xf32, #tpu.memory_space<vmem>>) attributes {dimension_semantics = [#tpu.dimension_semantics<parallel>], iteration_bounds = array<i64: 1>, scalar_prefetch = 0 : i64, scratch_operands = 0 : i64, tpu.core_type = #tpu.core_type<tc>, window_params = [{transform_indices = @transform_0, window_bounds = array<i64: 8, 16>}, {pipeline_mode = #tpu.pipeline_mode<synchronous>, transform_indices = @transform_1, window_bounds = array<i64: 16, 32>}, {pipeline_mode = #tpu.pipeline_mode<synchronous>, transform_indices = @transform_2, window_bounds = array<i64: 1, 32>}, {pipeline_mode = #tpu.pipeline_mode<synchronous>, transform_indices = @transform_3, window_bounds = array<i64: 32, 32>}, {pipeline_mode = #tpu.pipeline_mode<synchronous>, transform_indices = @transform_4, window_bounds = array<i64: 1, 32>}, {pipeline_mode = #tpu.pipeline_mode<synchronous>, transform_indices = @transform_5, window_bounds = array<i64: 32, 4>}, {pipeline_mode = #tpu.pipeline_mode<synchronous>, transform_indices = @transform_6, window_bounds = array<i64: 1, 4>}, {transform_indices = @transform_7, window_bounds = array<i64: 8, 4>}]} {
    %c0 = arith.constant 0 : index
    %c0_0 = arith.constant 0 : index
    %0 = vector.load %arg1[%c0, %c0_0] : memref<8x16xf32, #tpu.memory_space<vmem>>, vector<8x16xf32>
    %1 = arith.truncf %0 : vector<8x16xf32> to vector<8x16xbf16>
    %c0_1 = arith.constant 0 : index
    %c0_2 = arith.constant 0 : index
    %2 = vector.load %arg2[%c0_1, %c0_2] : memref<16x32xbf16, #tpu.memory_space<vmem>>, vector<16x32xbf16>
    %cst = arith.constant dense<0.000000e+00> : vector<8x32xf32>
    %3 = tpu.matmul %1, %2, %cst {dimension_numbers = #tpu.dot_dimension_numbers<[1], [0], [0], [1], [0, 0, 1, 1], [], []>} : vector<8x16xbf16>, vector<16x32xbf16>, vector<8x32xf32> -> vector<8x32xf32>
    %c0_3 = arith.constant 0 : index
    %c0_4 = arith.constant 0 : index
    %4 = vector.load %arg3[%c0_3, %c0_4] : memref<1x32xf32, #tpu.memory_space<vmem>>, vector<1x32xf32>
    %5 = vector.broadcast %4 : vector<1x32xf32> to vector<8x32xf32>
    %6 = arith.addf %3, %5 : vector<8x32xf32>
    %cst_5 = arith.constant 0.000000e+00 : f32
    %7 = vector.broadcast %cst_5 : f32 to vector<8x32xf32>
    %8 = arith.maximumf %6, %7 : vector<8x32xf32>
    %9 = arith.truncf %8 : vector<8x32xf32> to vector<8x32xbf16>
    %c0_6 = arith.constant 0 : index
    %c0_7 = arith.constant 0 : index
    %10 = vector.load %arg4[%c0_6, %c0_7] : memref<32x32xbf16, #tpu.memory_space<vmem>>, vector<32x32xbf16>
    %cst_8 = arith.constant dense<0.000000e+00> : vector<8x32xf32>
    %11 = tpu.matmul %9, %10, %cst_8 {dimension_numbers = #tpu.dot_dimension_numbers<[1], [0], [0], [1], [0, 0, 1, 1], [], []>} : vector<8x32xbf16>, vector<32x32xbf16>, vector<8x32xf32> -> vector<8x32xf32>
    %c0_9 = arith.constant 0 : index
    %c0_10 = arith.constant 0 : index
    %12 = vector.load %arg5[%c0_9, %c0_10] : memref<1x32xf32, #tpu.memory_space<vmem>>, vector<1x32xf32>
    %13 = vector.broadcast %12 : vector<1x32xf32> to vector<8x32xf32>
    %14 = arith.addf %11, %13 : vector<8x32xf32>
    %cst_11 = arith.constant 0.000000e+00 : f32
    %15 = vector.broadcast %cst_11 : f32 to vector<8x32xf32>
    %16 = arith.maximumf %14, %15 : vector<8x32xf32>
    %17 = arith.truncf %16 : vector<8x32xf32> to vector<8x32xbf16>
    %c0_12 = arith.constant 0 : index
    %c0_13 = arith.constant 0 : index
    %18 = vector.load %arg6[%c0_12, %c0_13] : memref<32x4xbf16, #tpu.memory_space<vmem>>, vector<32x4xbf16>
    %cst_14 = arith.constant dense<0.000000e+00> : vector<8x4xf32>
    %19 = tpu.matmul %17, %18, %cst_14 {dimension_numbers = #tpu.dot_dimension_numbers<[1], [0], [0], [1], [0, 0, 1, 1], [], []>} : vector<8x32xbf16>, vector<32x4xbf16>, vector<8x4xf32> -> vector<8x4xf32>
    %c0_15 = arith.constant 0 : index
    %c0_16 = arith.constant 0 : index
    %20 = vector.load %arg7[%c0_15, %c0_16] : memref<1x4xf32, #tpu.memory_space<vmem>>, vector<1x4xf32>
    %21 = vector.broadcast %20 : vector<1x4xf32> to vector<8x4xf32>
    %22 = arith.addf %19, %21 : vector<8x4xf32>
    %c0_17 = arith.constant 0 : index
    %c0_18 = arith.constant 0 : index
    %23 = vector.load %arg8[%c0_17, %c0_18] : memref<8x4xf32, #tpu.memory_space<vmem>>, vector<8x4xf32>
    tpu.vector_store %arg8[%c0_17, %c0_18], %22 {strides = array<i32>} : memref<8x4xf32, #tpu.memory_space<vmem>>, vector<8x4xf32>,
    return
  }
  func.func @transform_0(%arg0: i32) -> (i32, i32) {
    %c0_i32 = arith.constant 0 : i32
    %c0_i32_0 = arith.constant 0 : i32
    return %arg0, %c0_i32 : i32, i32
  }
  func.func @transform_1(%arg0: i32) -> (i32, i32) {
    %c0_i32 = arith.constant 0 : i32
    %c0_i32_0 = arith.constant 0 : i32
    %c0_i32_1 = arith.constant 0 : i32
    return %c0_i32, %c0_i32_0 : i32, i32
  }
  func.func @transform_2(%arg0: i32) -> (i32, i32) {
    %c0_i32 = arith.constant 0 : i32
    %c0_i32_0 = arith.constant 0 : i32
    %c0_i32_1 = arith.constant 0 : i32
    return %c0_i32, %c0_i32_0 : i32, i32
  }
  func.func @transform_3(%arg0: i32) -> (i32, i32) {
    %c0_i32 = arith.constant 0 : i32
    %c0_i32_0 = arith.constant 0 : i32
    %c0_i32_1 = arith.constant 0 : i32
    return %c0_i32, %c0_i32_0 : i32, i32
  }
  func.func @transform_4(%arg0: i32) -> (i32, i32) {
    %c0_i32 = arith.constant 0 : i32
    %c0_i32_0 = arith.constant 0 : i32
    %c0_i32_1 = arith.constant 0 : i32
    return %c0_i32, %c0_i32_0 : i32, i32
  }
  func.func @transform_5(%arg0: i32) -> (i32, i32) {
    %c0_i32 = arith.constant 0 : i32
    %c0_i32_0 = arith.constant 0 : i32
    %c0_i32_1 = arith.constant 0 : i32
    return %c0_i32, %c0_i32_0 : i32, i32
  }
  func.func @transform_6(%arg0: i32) -> (i32, i32) {
    %c0_i32 = arith.constant 0 : i32
    %c0_i32_0 = arith.constant 0 : i32
    %c0_i32_1 = arith.constant 0 : i32
    return %c0_i32, %c0_i32_0 : i32, i32
  }
  func.func @transform_7(%arg0: i32) -> (i32, i32) {
    %c0_i32 = arith.constant 0 : i32
    %c0_i32_0 = arith.constant 0 : i32
    return %arg0, %c0_i32 : i32, i32
  }
}

</mosaic_0001>

<bundles_post_ra>
// kernel: net1_forward.1
= control target key start
LH: loop header
LB: loop body
LE: loop exit
PB: predicated region body
PF: predicated region fallthrough
CT: control target
= control target key end

     0   :  { %12 = vsyncpa [#allocation3], 0  ;;  %s447_s0 = inlined_call_operand.vmem [shape: f32[8,16], index: 0, kind: input, shape index: {}]   ;;  %s448_s1 = inlined_call_operand.vmem [shape: bf16[16,32], index: 1, kind: input, shape index: {}]   ;;  %s449_s2 = inlined_call_operand.vmem [shape: f32[1,32], index: 2, kind: input, shape index: {}]   ;;  %s450_s3 = inlined_call_operand.vmem [shape: bf16[32,32], index: 3, kind: input, shape index: {}]   ;;  %s451_s4 = inlined_call_operand.hbm [shape: f32[1,32], index: 4, kind: input, shape index: {}]   ;;  %s452_s5 = inlined_call_operand.vmem [shape: bf16[32,4], index: 5, kind: input, shape index: {}]   ;;  %s453_s6 = inlined_call_operand.hbm [shape: f32[1,4], index: 6, kind: input, shape index: {}]   ;;  %s454_s7 = inlined_call_operand.vmem [shape: f32[8,4], index: 7, kind: output, shape index: {}]  }
   0x1   :  { %13 = vsyncpa [#allocation5], 0  ;;  %s355_s24 = smov [#allocation2]   ;;  %s356_s26 = smov [#allocation4]  }
   0x2   :  { %s28_s25 = sshll.u32 %s355_s24, 4  ;;  %s40_s27 = sshll.u32 %s356_s26, 4  ;;  %s29_s25 = int_to_ptr.vmem [resolvable:$true] %s28_s25  ;;  %s41_s27 = int_to_ptr.vmem [resolvable:$true] %s40_s27 }
   0x3   :  { %s307_s30 = scalar_lea.hbm %s451_s4, 16 }
   0x4   :  { %p308_p0 = scmp.ne.s32.totalorder %s451_s4, %s307_s30  ;;  %p311_p1 = scmp.lt.u32.totalorder %s307_s30, %s451_s4 }
   0x6   :  { %p313_p2 = pnand %p311_p1, %p308_p0 }
   0x8   :  { %316 = shalt.err (!%p313_p2)
}
   0x9   :  { %s317_s12 = scalar_lea.vmem %s29_s25, 16  ;;  %s321_s13 = scalar_lea.vmem %s29_s25, 32 }
   0xa   :  { %p318_p3 = scmp.ne.s32.totalorder %s29_s25, %s317_s12  ;;  %p322_p4 = scmp.lt.s32.totalorder %s29_s25, %s29_s25 }
   0xb   :  { %p323_p5 = scmp.lt.s32.totalorder %s321_s13, %s317_s12 }
   0xd   :  { %p324_p6 = por %p323_p5, %p322_p4 }
   0xf   :  { %p325_p7 = pnand %p324_p6, %p318_p3 }
  0x11   :  { %328 = shalt.err (!%p325_p7)
}
  0x12   :  { %31 = dma.hbm_to_vmem [thread:$0]  %s451_s4, 16, %s29_s25, [#allocation3]  }
  0x13   :  { %s329_s18 = scalar_lea.hbm %s453_s6, 16 }
  0x14   :  { %p330_p8 = scmp.ne.s32.totalorder %s453_s6, %s329_s18  ;;  %p333_p9 = scmp.lt.u32.totalorder %s329_s18, %s453_s6 }
  0x16   :  { %p335_p10 = pnand %p333_p9, %p330_p8 }
  0x18   :  { %338 = shalt.err (!%p335_p10)
}
  0x19   :  { %s339_s23 = scalar_lea.vmem %s41_s27, 16  ;;  %s343_s24 = scalar_lea.vmem %s41_s27, 32 }
  0x1a   :  { %p340_p11 = scmp.ne.s32.totalorder %s41_s27, %s339_s23  ;;  %p344_p12 = scmp.lt.s32.totalorder %s41_s27, %s41_s27 }
  0x1b   :  { %p345_p13 = scmp.lt.s32.totalorder %s343_s24, %s339_s23 }
  0x1d   :  { %p346_p0 = por %p345_p13, %p344_p12 }
  0x1f   :  { %p347_p1 = pnand %p346_p0, %p340_p11 }
  0x21   :  { %350 = shalt.err (!%p347_p1)
}
  0x22   :  { %43 = dma.hbm_to_vmem [thread:$0]  %s453_s6, 16, %s41_s27, [#allocation5]  }
  0x23   :  { %351 = dma.done.wait [#allocation3], 16  }
  0x24   :  { %352 = vsyncadd [#allocation3], 4294967280 }
  0x25   :  { %353 = dma.done.wait [#allocation5], 16  }
  0x26   :  { %354 = vsyncadd [#allocation5], 4294967280  ;;  %v357_v0 = vmov 0.0   ;;  %vm358_vm0 = vmmov 0   ;;  %v302_v1 = vld [vmem:[%s448_s1] sm:$0xff]   ;;  %vm68_vm1 = vcmask 130048  }
  0x27   :  { %276 = vmatprep.subr.bf16.mxu0 %v357_v0  ;;  %278 = vmatprep.mubr.msk.bf16.mxu0 %vm358_vm0, %v357_v0  ;;  %v51_v2 = vld [vmem:[%s447_s0] sm:$0xff]  ;;  %v304_v5 = vld [vmem:[%s450_s3 + $0x8] sm:$0xff]   ;;  %vm137_vm2 = vcmask 261120   ;;  %vm249_vm3 = vcmask 31744  }
  0x28   :  { %282 = vmatprep.subr.bf16.mxu1 %v357_v0  ;;  %286 = vmatprep.mubr.msk.bf16.mxu1 %vm358_vm0, %v357_v0  ;;  %v52_v3 = vpack.c.bf16 %v51_v2, %v51_v2  ;;  %v303_v4 = vld [vmem:[%s450_s3] sm:$0xff]   ;;  %v306_v15 = vld [vmem:[%s452_s5 + $0x8] sm:$0xff]  }
  0x29   :  { %277 = vmatpush3.bf16.msra.mxu0 %v302_v1  ;;  %283 = vmatpush3.bf16.msra.mxu1 %v303_v4  ;;  %v305_v6 = vld [vmem:[%s452_s5] sm:$0xff]  }
  0x2a   :  { %290 = vmatprep.subr.bf16.mxu0 %v357_v0  ;;  %284 = vmatprep.subr.bf16.mxu1 %v357_v0  ;;  %v257_v7 = vld [vmem:[%s449_s2] ss:$0 sm:$0xff]  ;;  %v264_v24 = vld [vmem:[#allocation4] ss:$0 sm:$0xff] }
  0x2b   :  { %v260_v16 = vld [vmem:[#allocation2] ss:$0 sm:$0xff] }
  0x2c   :  { %279 = vmatmul.mubr.msk.bf16.vlgmr.msra.gmra.mrb[0].mxu0 %vm68_vm1, %v52_v3 }
  0x2d   :  { %294 = vmatprep.mubr.msk.bf16.mxu0 %vm358_vm0, %v357_v0  ;;  %285 = vmatpush3.bf16.msra.mxu1 %v304_v5 }
  0x2e   :  { %291 = vmatpush3.bf16.msra.mxu0 %v305_v6 }
  0x2f   :  { %292 = vmatprep.subr.bf16.mxu0 %v357_v0 }
  0x32   :  { %293 = vmatpush3.bf16.msra.mxu0 %v306_v15 }
  0xff   :  { %v106_v8 = vpop.f32.mrb[0].mxu0 }
 0x100   :  { %v107_v9 = vadd.f32 %v257_v7, %v106_v8  ;;  %v280_v10 = vpop.f32.mrb[1].mxu0 }
 0x101   :  { %v109_v11 = vpop.f32.mrb[2].mxu0 }
 0x102   :  { %v112_v12 = vmax.f32 %v107_v9, 0.0  ;;  %v281_v13 = vpop.f32.mrb[3].mxu0 }
 0x104   :  { %v113_v14 = vpack.c.bf16 %v112_v12, %v112_v12 }
 0x106   :  { %287 = vmatmul.mubr.msk.bf16.vlgmr.msra.gmra.mrb[0].mxu1 %vm137_vm2, %v113_v14 }
 0x1d9   :  { %v175_v17 = vpop.f32.mrb[0].mxu1 }
 0x1da   :  { %v176_v18 = vadd.f32 %v260_v16, %v175_v17  ;;  %v288_v19 = vpop.f32.mrb[1].mxu1 }
 0x1db   :  { %v178_v20 = vpop.f32.mrb[2].mxu1 }
 0x1dc   :  { %v181_v21 = vmax.f32 %v176_v18, 0.0  ;;  %v289_v22 = vpop.f32.mrb[3].mxu1 }
 0x1de   :  { %v182_v23 = vpack.c.bf16 %v181_v21, %v181_v21 }
 0x1e0   :  { %295 = vmatmul.mubr.msk.bf16.vlgmr.msra.gmra.mrb[4].mxu0 %vm137_vm2, %v182_v23 }
 0x2b3   :  { %v243_v25 = vpop.f32.mrb[4].mxu0 }
 0x2b4   :  { %v244_v26 = vadd.f32 %v264_v24, %v243_v25  ;;  %v296_v27 = vpop.f32.mrb[5].mxu0 }
 0x2b5   :  { %v246_v28 = vpop.f32.mrb[6].mxu0 }
 0x2b6   :  { %250 = vst.msk [vmem:[%s454_s7] sm:$0xff] %vm249_vm3, %v244_v26  ;;  %v297_v29 = vpop.f32.mrb[7].mxu0 }
 0x2b7   :  { %255 = vsyncpa [#allocation3], 1 }
 0x2b8   :  { %256 = vsyncpa [#allocation5], 1 }

</bundles_post_ra>
